<compile_context>
chip_gen: v7x
topology: tpu7x:2x2x1
jax: 0.10.0
libtpu: 0.0.40
codegen_flags: <defaults>
</compile_context>

<pallas_src>
import functools

import jax
import jax.numpy as jnp
from jax.experimental import pallas as pl
from jax.experimental.pallas import tpu as pltpu


def _round_up(x, m):
    return (x + m - 1) // m * m


def _cdiv(a, b):
    return (a + b - 1) // b


def _pick_epi_chunk(row_tile, sublane):
    """Largest epilogue sub-block (<= 256 rows) that divides row_tile."""
    if row_tile <= 256:
        return row_tile
    for c in (256, 128, 64, 32, 16, 8):
        if c >= sublane and row_tile % c == 0:
            return c
    return row_tile


def _choose_tiling(M, H, act_bytes, w_bytes, row_tile_req=None, k_tile_req=None):
    """Generation-aware (row_tile, k_tile, vmem_limit) selection."""
    sublane = 16 if act_bytes == 2 else 8
    try:
        vmem_cap = int(pltpu.get_tpu_info().vmem_capacity_bytes)
    except Exception:  # info unavailable -> assume the smallest (v7x per-TC) VMEM
        vmem_cap = 64 * 1024 * 1024
    small_vmem = vmem_cap <= 64 * 1024 * 1024
    # Scoped-VMEM cap: ~112 MiB on 128 MiB parts (v5e/v6e), ~56 MiB on v7x,
    # leaving headroom for Mosaic internal scratch.
    hard_cap = min(vmem_cap - (8 << 20), vmem_cap * 7 // 8)
    budget = hard_cap - (4 << 20)
    row_cap = 512 if small_vmem else 1024

    m_al = _round_up(max(M, 1), sublane)

    def usage(tm, tk, resident):
        ec = _pick_epi_chunk(tm, sublane)
        w_vmem = H * H * w_bytes if resident else 2 * tk * H * w_bytes
        return (2 * tm * tk * act_bytes        # h stream (double buffered)
                + 2 * tm * H * act_bytes       # residual stream
                + 2 * tm * H * act_bytes       # output stream
                + w_vmem                       # weight (resident or streamed)
                + tm * H * 4                   # f32 accumulator scratch
                + 3 * ec * H * 4               # epilogue f32 temporaries
                + 8 * _round_up(H, 128) * 4)   # bias / gamma / beta + slack

    # Contraction-tile candidates: multiples of 128 dividing H, plus tk == H.
    if k_tile_req is not None:
        kt = min(k_tile_req, H)
        if H % kt != 0 or (kt != H and kt % 128 != 0):
            kt = H
        k_cands = [kt]
    else:
        k_cands = [H] + [t for t in (1024, 512, 256, 128) if t < H and H % t == 0]

    if row_tile_req is not None:
        tm_cands = [_round_up(max(sublane, min(row_tile_req, m_al)), sublane)]
    else:
        tm_cands = sorted(
            {min(t, m_al) for t in (1024, 768, 512, 384, 256, 128, 64, 32, 16, 8)
             if t <= row_cap and t % sublane == 0},
            reverse=True)
        tm_cands = [t for t in tm_cands if t >= sublane] or [sublane]

    # 1) Prefer a VMEM-resident weight: it is then fetched from HBM once total.
    if k_cands[0] == H:
        for tm in tm_cands:
            if tm >= min(256, m_al) and usage(tm, H, True) <= budget:
                return dict(row_tile=tm, k_tile=H, vmem_limit=hard_cap,
                            sublane=sublane)
    # 2) Otherwise stream the weight over K with the largest row tile that fits.
    for tm in tm_cands:
        for tk in k_cands:
            if usage(tm, tk, tk == H) <= budget:
                return dict(row_tile=tm, k_tile=tk, vmem_limit=hard_cap,
                            sublane=sublane)
    # 3) Degenerate fallback: smallest candidates.
    return dict(row_tile=tm_cands[-1], k_tile=k_cands[-1], vmem_limit=hard_cap,
                sublane=sublane)


def _self_output_kernel(h_ref, x_ref, w_ref, b_ref, g_ref, beta_ref,
                        o_ref, acc_ref, *, eps, inv_h, epi_chunk):
    # h_ref   : (TM, TK)  attention-output rows, current K slice (native dtype)
    # x_ref   : (TM, H)   residual rows (full hidden)
    # w_ref   : (TK, H)   dense weight in [in, out] layout, current K slice
    # b_ref   : (1, H)    dense bias
    # g_ref   : (1, H)    LayerNorm weight (gamma)
    # beta_ref: (1, H)    LayerNorm bias (beta)
    # o_ref   : (TM, H)   output rows
    # acc_ref : (TM, H)   f32 matmul accumulator (VMEM scratch)
    k = pl.program_id(1)
    last_k = pl.num_programs(1) - 1

    # Partial product for this K slice; MXU accumulates in f32.
    part = jnp.dot(h_ref[...], w_ref[...], preferred_element_type=jnp.float32)

    @pl.when(k == 0)
    def _first():
        # Fold bias + residual into the first partial product: no zero-init
        # read-modify-write of the accumulator and no extra epilogue pass.
        acc_ref[...] = (part
                        + b_ref[...].astype(jnp.float32)
                        + x_ref[...].astype(jnp.float32))

    @pl.when(k > 0)
    def _accumulate():
        acc_ref[...] += part

    @pl.when(k == last_k)
    def _epilogue():
        # TODO(synk): dropout is the eval-mode identity; training-mode
        # stochastic dropout (pltpu.prng_*) is not implemented here.
        gamma = g_ref[...].astype(jnp.float32)
        beta = beta_ref[...].astype(jnp.float32)

        def layer_norm(y):
            # Two-pass statistics (matches the torch reference numerics).
            mean = jnp.sum(y, axis=-1, keepdims=True) * inv_h
            yc = y - mean
            var = jnp.sum(yc * yc, axis=-1, keepdims=True) * inv_h
            return gamma * (yc * jax.lax.rsqrt(var + eps)) + beta

        tm = acc_ref.shape[0]
        if epi_chunk >= tm:
            o_ref[...] = layer_norm(acc_ref[...]).astype(o_ref.dtype)
        else:
            # Chunk the epilogue to bound the (rows, H) f32 temporaries.
            @pl.loop(0, tm // epi_chunk)
            def _(c):
                r = pl.multiple_of(c * epi_chunk, epi_chunk)
                rows = pl.ds(r, epi_chunk)
                o_ref[rows, :] = layer_norm(acc_ref[rows, :]).astype(o_ref.dtype)


def self_output(hidden_states, input_tensor, dense_w, dense_b, ln_w, ln_b, *,
                eps=1e-12, row_tile=None, k_tile=None,
                single_buffer_constants=True):
    """Fused SelfOutput forward.

    hidden_states, input_tensor: [B, S, H]
    dense_w: [H, H] in PyTorch nn.Linear layout (out, in); dense_b/ln_w/ln_b: [H].
    """
    B, S, H = hidden_states.shape
    M = B * S
    dtype = hidden_states.dtype
    act_bytes = jnp.dtype(dtype).itemsize
    w_bytes = jnp.dtype(dense_w.dtype).itemsize

    cfg = _choose_tiling(M, H, act_bytes, w_bytes,
                         row_tile_req=row_tile, k_tile_req=k_tile)
    tm, tk, sublane = cfg["row_tile"], cfg["k_tile"], cfg["sublane"]

    # Keep >= 2 row tiles when M allows so the "parallel" axis feeds both
    # TensorCores on v7x (1-TC chips are unaffected).
    if row_tile is None and _cdiv(M, tm) == 1 and M > sublane:
        tm = _round_up(_cdiv(M, 2), sublane)
    epi_chunk = _pick_epi_chunk(tm, sublane)

    m_pad = _cdiv(M, tm) * tm
    num_k = H // tk
    num_row_tiles = m_pad // tm

    h2 = hidden_states.reshape(M, H)
    x2 = input_tensor.reshape(M, H)
    if m_pad != M:
        h2 = jnp.pad(h2, ((0, m_pad - M), (0, 0)))
        x2 = jnp.pad(x2, ((0, m_pad - M), (0, 0)))
    # Pre-transpose the PyTorch [out, in] weight to [in, out] once (in a real
    # model do this at parameter-load time) so the hot loop contracts on axis
    # 0 of the RHS and never needs an in-kernel XLU transpose.
    # TODO(synk): optional bf16 cast of f32 matmul operands is not applied
    # here; it needs an accuracy gate.
    w_t = jnp.transpose(dense_w)
    b2 = dense_b.reshape(1, H)
    g2 = ln_w.reshape(1, H)
    beta2 = ln_b.reshape(1, H)

    # Actual HBM traffic: activation/residual/output streams once; the weight
    # streams once total when resident (num_k == 1) or once per row tile when
    # it is K-tiled.
    w_traffic = (1 if num_k == 1 else num_row_tiles) * H * H * w_bytes
    cost = pl.CostEstimate(
        flops=2 * M * H * H + 10 * M * H,
        transcendentals=M,                       # one rsqrt per row
        bytes_accessed=3 * M * H * act_bytes + w_traffic + 3 * H * 4,
    )

    kernel = functools.partial(_self_output_kernel, eps=eps, inv_h=1.0 / H,
                               epi_chunk=epi_chunk)

    def build(single_buffer):
        const_kw = {"pipeline_mode": pl.Buffered(1)} if single_buffer else {}
        w_kw = const_kw if num_k == 1 else {}   # resident weight: fetched once
        in_specs = [
            pl.BlockSpec((tm, tk), lambda i, k: (i, k)),            # h rows, K slice
            pl.BlockSpec((tm, H), lambda i, k: (i, 0)),             # residual rows
            pl.BlockSpec((tk, H), lambda i, k: (k, 0), **w_kw),     # weight [in,out]
            pl.BlockSpec((1, H), lambda i, k: (0, 0), **const_kw),  # dense bias
            pl.BlockSpec((1, H), lambda i, k: (0, 0), **const_kw),  # LN gamma
            pl.BlockSpec((1, H), lambda i, k: (0, 0), **const_kw),  # LN beta
        ]
        return pl.pallas_call(
            kernel,
            out_shape=jax.ShapeDtypeStruct((m_pad, H), dtype),
            grid_spec=pltpu.PrefetchScalarGridSpec(
                num_scalar_prefetch=0,
                grid=(num_row_tiles, num_k),
                in_specs=in_specs,
                out_specs=pl.BlockSpec((tm, H), lambda i, k: (i, 0)),
                scratch_shapes=[pltpu.VMEM((tm, H), jnp.float32)],
            ),
            compiler_params=pltpu.CompilerParams(
                dimension_semantics=("parallel", "arbitrary"),
                vmem_limit_bytes=int(cfg["vmem_limit"]),
            ),
            cost_estimate=cost,
        )

    args = (h2, x2, w_t, b2, g2, beta2)
    if single_buffer_constants:
        try:
            out = build(True)(*args)
        except (TypeError, ValueError, NotImplementedError,
                pltpu.LoweringException):
            # pipeline_mode=pl.Buffered(1) unsupported in this build; fall back
            # to default double buffering (correctness unchanged).
            out = build(False)(*args)
    else:
        out = build(False)(*args)

    return out[:M].reshape(B, S, H)


def _reference(hidden_states, input_tensor, dense_w, dense_b, ln_w, ln_b,
               eps=1e-12):
    y = jnp.einsum("bsh,oh->bso", hidden_states, dense_w) + dense_b
    y = y + input_tensor
    u = jnp.mean(y, axis=-1, keepdims=True)
    s = jnp.mean((y - u) ** 2, axis=-1, keepdims=True)
    y = (y - u) / jnp.sqrt(s + eps)
    return ln_w * y + ln_b


if __name__ == "__main__":
    key = jax.random.PRNGKey(0)

    def run_case(B, S, H, **kw):
        k1, k2, k3, k4 = jax.random.split(jax.random.fold_in(key, H), 4)
        hidden_states = jax.random.normal(k1, (B, S, H), dtype=jnp.float32)
        input_tensor = jax.random.normal(k2, (B, S, H), dtype=jnp.float32)
        # Deterministic parameter init (synthetic, not a checkpoint load)
        dense_w = jax.random.normal(k3, (H, H), jnp.float32) * (1.0 / jnp.sqrt(H))
        dense_b = jax.random.normal(k4, (H,), jnp.float32) * 0.02
        ln_w = jnp.ones((H,), jnp.float32)
        ln_b = jnp.zeros((H,), jnp.float32)

        out = self_output(hidden_states, input_tensor, dense_w, dense_b,
                          ln_w, ln_b, **kw)
        out = jax.block_until_ready(out)
        ref = _reference(hidden_states, input_tensor, dense_w, dense_b, ln_w, ln_b)
        assert out.shape == (B, S, H)
        assert jnp.allclose(out, ref, atol=2e-4, rtol=2e-4), \
            f"mismatch vs reference (B={B}, S={S}, H={H})"

    # Spec-sized small case (hidden=32): weight-resident, k_tile == H path.
    run_case(2, 8, 32)
    # Lane-aligned case exercising K-tiled accumulation, row padding,
    # >= 2 row tiles and the chunked epilogue.
    run_case(2, 320, 256, row_tile=512, k_tile=128)

    print("KERNEL_OK")
</pallas_src>

<mosaic_0001>
module attributes {stable_mosaic.version = 11 : i64} {
  func.func @_self_output_kernel(%arg0: i32, %arg1: i32, %arg2: memref<8x32xf32, #tpu.memory_space<vmem>>, %arg3: memref<8x32xf32, #tpu.memory_space<vmem>>, %arg4: memref<32x32xf32, #tpu.memory_space<vmem>>, %arg5: memref<1x32xf32, #tpu.memory_space<vmem>>, %arg6: memref<1x32xf32, #tpu.memory_space<vmem>>, %arg7: memref<1x32xf32, #tpu.memory_space<vmem>>, %arg8: memref<8x32xf32, #tpu.memory_space<vmem>>, %arg9: memref<8x32xf32, #tpu.memory_space<vmem>>) attributes {dimension_semantics = [#tpu.dimension_semantics<parallel>, #tpu.dimension_semantics<arbitrary>], iteration_bounds = array<i64: 2, 1>, scalar_prefetch = 0 : i64, scratch_operands = 1 : i64, tpu.core_type = #tpu.core_type<tc>, window_params = [{transform_indices = @transform_0, window_bounds = array<i64: 8, 32>}, {transform_indices = @transform_1, window_bounds = array<i64: 8, 32>}, {pipeline_mode = #tpu.pipeline_mode<synchronous>, transform_indices = @transform_2, window_bounds = array<i64: 32, 32>}, {pipeline_mode = #tpu.pipeline_mode<synchronous>, transform_indices = @transform_3, window_bounds = array<i64: 1, 32>}, {pipeline_mode = #tpu.pipeline_mode<synchronous>, transform_indices = @transform_4, window_bounds = array<i64: 1, 32>}, {pipeline_mode = #tpu.pipeline_mode<synchronous>, transform_indices = @transform_5, window_bounds = array<i64: 1, 32>}, {transform_indices = @transform_6, window_bounds = array<i64: 8, 32>}]} {
    %c0 = arith.constant 0 : index
    %c0_0 = arith.constant 0 : index
    %0 = vector.load %arg2[%c0, %c0_0] : memref<8x32xf32, #tpu.memory_space<vmem>>, vector<8x32xf32>
    %c0_1 = arith.constant 0 : index
    %c0_2 = arith.constant 0 : index
    %1 = vector.load %arg4[%c0_1, %c0_2] : memref<32x32xf32, #tpu.memory_space<vmem>>, vector<32x32xf32>
    %cst = arith.constant dense<0.000000e+00> : vector<8x32xf32>
    %2 = tpu.matmul %0, %1, %cst {dimension_numbers = #tpu.dot_dimension_numbers<[1], [0], [0], [1], [0, 0, 1, 1], [], []>} : vector<8x32xf32>, vector<32x32xf32>, vector<8x32xf32> -> vector<8x32xf32>
    %c0_i32 = arith.constant 0 : i32
    %3 = arith.cmpi eq, %arg1, %c0_i32 : i32
    %4 = arith.extui %3 : i1 to i32
    %c0_i32_3 = arith.constant 0 : i32
    %5 = arith.cmpi ne, %4, %c0_i32_3 : i32
    scf.if %5 {
      %c0_8 = arith.constant 0 : index
      %c0_9 = arith.constant 0 : index
      %12 = vector.load %arg5[%c0_8, %c0_9] : memref<1x32xf32, #tpu.memory_space<vmem>>, vector<1x32xf32>
      %13 = vector.broadcast %12 : vector<1x32xf32> to vector<8x32xf32>
      %14 = arith.addf %2, %13 : vector<8x32xf32>
      %c0_10 = arith.constant 0 : index
      %c0_11 = arith.constant 0 : index
      %15 = vector.load %arg3[%c0_10, %c0_11] : memref<8x32xf32, #tpu.memory_space<vmem>>, vector<8x32xf32>
      %16 = arith.addf %14, %15 : vector<8x32xf32>
      %c0_12 = arith.constant 0 : index
      %c0_13 = arith.constant 0 : index
      %17 = vector.load %arg9[%c0_12, %c0_13] : memref<8x32xf32, #tpu.memory_space<vmem>>, vector<8x32xf32>
      tpu.vector_store %arg9[%c0_12, %c0_13], %16 {strides = array<i32>} : memref<8x32xf32, #tpu.memory_space<vmem>>, vector<8x32xf32>,
    } else {
    }
    %c0_i32_4 = arith.constant 0 : i32
    %6 = arith.cmpi sgt, %arg1, %c0_i32_4 : i32
    %7 = arith.extui %6 : i1 to i32
    %c0_i32_5 = arith.constant 0 : i32
    %8 = arith.cmpi ne, %7, %c0_i32_5 : i32
    scf.if %8 {
      %c0_8 = arith.constant 0 : index
      %c0_9 = arith.constant 0 : index
      %12 = vector.load %arg9[%c0_8, %c0_9] : memref<8x32xf32, #tpu.memory_space<vmem>>, vector<8x32xf32>
      %13 = arith.addf %12, %2 : vector<8x32xf32>
      %c0_10 = arith.constant 0 : index
      %c0_11 = arith.constant 0 : index
      %14 = vector.load %arg9[%c0_10, %c0_11] : memref<8x32xf32, #tpu.memory_space<vmem>>, vector<8x32xf32>
      tpu.vector_store %arg9[%c0_10, %c0_11], %13 {strides = array<i32>} : memref<8x32xf32, #tpu.memory_space<vmem>>, vector<8x32xf32>,
    } else {
    }
    %c0_i32_6 = arith.constant 0 : i32
    %9 = arith.cmpi eq, %arg1, %c0_i32_6 : i32
    %10 = arith.extui %9 : i1 to i32
    %c0_i32_7 = arith.constant 0 : i32
    %11 = arith.cmpi ne, %10, %c0_i32_7 : i32
    scf.if %11 {
      %c0_8 = arith.constant 0 : index
      %c0_9 = arith.constant 0 : index
      %12 = vector.load %arg6[%c0_8, %c0_9] : memref<1x32xf32, #tpu.memory_space<vmem>>, vector<1x32xf32>
      %c0_10 = arith.constant 0 : index
      %c0_11 = arith.constant 0 : index
      %13 = vector.load %arg7[%c0_10, %c0_11] : memref<1x32xf32, #tpu.memory_space<vmem>>, vector<1x32xf32>
      %c0_12 = arith.constant 0 : index
      %c0_13 = arith.constant 0 : index
      %14 = vector.load %arg9[%c0_12, %c0_13] : memref<8x32xf32, #tpu.memory_space<vmem>>, vector<8x32xf32>
      %cst_14 = arith.constant dense<0.000000e+00> : vector<8xf32>
      %15 = vector.multi_reduction <add>, %14, %cst_14 [1] : vector<8x32xf32> to vector<8xf32>
      %16 = vector.shape_cast %15 : vector<8xf32> to vector<8x1xf32>
      %cst_15 = arith.constant 3.125000e-02 : f32
      %17 = vector.broadcast %cst_15 : f32 to vector<8x1xf32>
      %18 = arith.mulf %16, %17 : vector<8x1xf32>
      %19 = vector.broadcast %18 : vector<8x1xf32> to vector<8x32xf32>
      %20 = arith.subf %14, %19 : vector<8x32xf32>
      %21 = arith.mulf %20, %20 : vector<8x32xf32>
      %cst_16 = arith.constant dense<0.000000e+00> : vector<8xf32>
      %22 = vector.multi_reduction <add>, %21, %cst_16 [1] : vector<8x32xf32> to vector<8xf32>
      %23 = vector.shape_cast %22 : vector<8xf32> to vector<8x1xf32>
      %cst_17 = arith.constant 3.125000e-02 : f32
      %24 = vector.broadcast %cst_17 : f32 to vector<8x1xf32>
      %25 = arith.mulf %23, %24 : vector<8x1xf32>
      %cst_18 = arith.constant 9.99999996E-13 : f32
      %26 = vector.broadcast %cst_18 : f32 to vector<8x1xf32>
      %27 = arith.addf %25, %26 : vector<8x1xf32>
      %28 = math.rsqrt %27 : vector<8x1xf32>
      %29 = vector.broadcast %28 : vector<8x1xf32> to vector<8x32xf32>
      %30 = arith.mulf %20, %29 : vector<8x32xf32>
      %31 = vector.broadcast %12 : vector<1x32xf32> to vector<8x32xf32>
      %32 = arith.mulf %31, %30 : vector<8x32xf32>
      %33 = vector.broadcast %13 : vector<1x32xf32> to vector<8x32xf32>
      %34 = arith.addf %32, %33 : vector<8x32xf32>
      %c0_19 = arith.constant 0 : index
      %c0_20 = arith.constant 0 : index
      %35 = vector.load %arg8[%c0_19, %c0_20] : memref<8x32xf32, #tpu.memory_space<vmem>>, vector<8x32xf32>
      tpu.vector_store %arg8[%c0_19, %c0_20], %34 {strides = array<i32>} : memref<8x32xf32, #tpu.memory_space<vmem>>, vector<8x32xf32>,
    } else {
    }
    return
  }
  func.func @transform_0(%arg0: i32, %arg1: i32) -> (i32, i32) {
    %c0_i32 = arith.constant 0 : i32
    return %arg0, %arg1 : i32, i32
  }
  func.func @transform_1(%arg0: i32, %arg1: i32) -> (i32, i32) {
    %c0_i32 = arith.constant 0 : i32
    %c0_i32_0 = arith.constant 0 : i32
    return %arg0, %c0_i32 : i32, i32
  }
  func.func @transform_2(%arg0: i32, %arg1: i32) -> (i32, i32) {
    %c0_i32 = arith.constant 0 : i32
    %c0_i32_0 = arith.constant 0 : i32
    return %arg1, %c0_i32 : i32, i32
  }
  func.func @transform_3(%arg0: i32, %arg1: i32) -> (i32, i32) {
    %c0_i32 = arith.constant 0 : i32
    %c0_i32_0 = arith.constant 0 : i32
    %c0_i32_1 = arith.constant 0 : i32
    return %c0_i32, %c0_i32_0 : i32, i32
  }
  func.func @transform_4(%arg0: i32, %arg1: i32) -> (i32, i32) {
    %c0_i32 = arith.constant 0 : i32
    %c0_i32_0 = arith.constant 0 : i32
    %c0_i32_1 = arith.constant 0 : i32
    return %c0_i32, %c0_i32_0 : i32, i32
  }
  func.func @transform_5(%arg0: i32, %arg1: i32) -> (i32, i32) {
    %c0_i32 = arith.constant 0 : i32
    %c0_i32_0 = arith.constant 0 : i32
    %c0_i32_1 = arith.constant 0 : i32
    return %c0_i32, %c0_i32_0 : i32, i32
  }
  func.func @transform_6(%arg0: i32, %arg1: i32) -> (i32, i32) {
    %c0_i32 = arith.constant 0 : i32
    %c0_i32_0 = arith.constant 0 : i32
    return %arg0, %c0_i32 : i32, i32
  }
}

</mosaic_0001>

<bundles_post_ra>
// kernel: tpu_custom_call.1
= control target key start
LH: loop header
LB: loop body
LE: loop exit
PB: predicated region body
PF: predicated region fallthrough
CT: control target
= control target key end

     0   :  { %s1222_s0 = inlined_call_operand.hbm [shape: f32[16,32], index: 0, kind: input, shape index: {}]   ;;  %s1223_s1 = inlined_call_operand.hbm [shape: f32[16,32], index: 1, kind: input, shape index: {}]   ;;  %s1224_s2 = inlined_call_operand.hbm [shape: f32[32,32], index: 2, kind: input, shape index: {}]   ;;  %s1225_s3 = inlined_call_operand.vmem [shape: f32[1,32], index: 3, kind: input, shape index: {}]   ;;  %s1226_s4 = inlined_call_operand.vmem [shape: f32[1,32], index: 4, kind: input, shape index: {}]   ;;  %s1227_s5 = inlined_call_operand.vmem [shape: f32[1,32], index: 5, kind: input, shape index: {}]   ;;  %s1228_s6 = inlined_call_operand.hbm [shape: f32[16,32], index: 6, kind: output, shape index: {}]  }
   0x1   :  { %1236 = sst [smem:[#allocation18_spill]] %s1224_s2 }
   0x2   :  { %11 = vsyncpa [#allocation4], 0 }
   0x3   :  { %13 = vsyncpa [#allocation4 + $0x1], 0 }
   0x4   :  { %14 = vsyncpa [#allocation7], 0 }
   0x5   :  { %16 = vsyncpa [#allocation7 + $0x1], 0 }
   0x6   :  { %17 = vsyncpa [#allocation5], 0 }
   0x7   :  { %19 = vsyncpa [#allocation5 + $0x1], 0  ;;  %s957_s21 = smov 0   ;;  %s959_s22 = smov 0  }
   0x8   :  { %s961_s23 = smov 0   ;;  %s963_s24 = smov 0  }
   0x9   :  { %s965_s25 = smov 0   ;;  %s967_s26 = smov 0  }
   0xa LB: > { %1237 = sst [smem:[#allocation14_spill]] %s899_s23  ;;  %s988_s27 = sadd.s32 4294967295, %s911_s26   ;;  %s911_s26 = sphi %s967_s26, %s25_s26   ;;  %s907_s25 = sphi %s965_s25, %s1260_s25   ;;  %s903_s24 = sphi %s963_s24, %s1259_s24   ;;  %s899_s23 = sphi %s961_s23, %s1258_s23   ;;  %s895_s22 = sphi %s959_s22, %s1262_s22   ;;  %s891_s21 = sphi %s957_s21, %s1261_s21  }
   0xb   : > { %1238 = sst [smem:[#allocation15_spill]] %s907_s25  ;;  %s605_s28 = sadd.s32 4294967294, %s911_s26  }
   0xc   : > { %p59_p0 = scmp.ne.s32.totalorder %s895_s22, %s891_s21  ;;  %p1229_p1 = scmp.eq.s32.totalorder %s988_s27, 0 }
   0xd   : > { %p204_p3 = scmp.eq.s32.totalorder %s605_s28, 1  ;;  %p606_p5 = scmp.ge.s32.totalorder %s911_s26, 1 }
   0xe   : > { %p997_p4 = por %p1229_p1, %p59_p0  ;;  %p211_p7 = scmp.lt.s32.totalorder %s911_s26, 3 }
   0xf   : > { %p1002_p6 = por %p204_p3, %p59_p0  ;;  %s913_s8 = smov [#allocation8]  }
  0x10   : > { %s1239_s29 = scalar_select %p997_p4, 1, 0 }
  0x11   : > { %s1240_s30 = scalar_select %p1002_p6, 1, 0 }
  0x12   : > { %p1007_p8 = pnand %p606_p5, %p211_p7  ;;  %s226_s9 = sshll.u32 %s913_s8, 4  ;;  %s227_s9 = int_to_ptr.vmem [resolvable:$true] %s226_s9 }
  0x13   : > { %s37_s11 = sadd.s32 1, %s907_s25  ;;  %s1243_s2 = sld [smem:[#allocation18_spill]] }
  0x14   : > { %s1241_s7 = scalar_select %p1007_p8, 1, 0 }
  0x15   : > { %p658_p9 = pneg %p1007_p8 }
  0x17   : > { %p1016_p11 = pnand %p658_p9, %p1229_p1 }
  0x19   : > { %s733_s14 = scalar_lea.hbm %s1243_s2, 512  ;;  %p735_p13 = pneg %p1016_p11 }
  0x1a   : > { %p734_p12 = scmp.ne.s32.totalorder %s1243_s2, %s733_s14  ;;  %p740_p5 = scmp.lt.u32.totalorder %s733_s14, %s1243_s2 }
  0x1c   : > { %p736_p0 = pnand %p735_p13, %p734_p12 }
  0x1e   : > { %p737_p3 = pneg %p736_p0 }
  0x20   : > { %p742_p7 = pnand %p740_p5, %p737_p3 }
  0x22   : > { %745 = shalt.err (!%p742_p7)
}
  0x23   : > { %s746_s19 = scalar_lea.vmem %s227_s9, 512  ;;  %p754_p2 = scmp.lt.s32.totalorder %s227_s9, %s227_s9 }
  0x24   : > { %p747_p9 = scmp.ne.s32.totalorder %s227_s9, %s746_s19  ;;  %p755_p6 = scmp.lt.s32.totalorder %s746_s19, %s746_s19 }
  0x26   : > { %p749_p10 = pnand %p747_p9, %p735_p13  ;;  %p756_p4 = por %p755_p6, %p754_p2 }
  0x28   : > { %p750_p1 = pneg %p749_p10 }
  0x2a   : > { %p757_p8 = pnand %p756_p4, %p750_p1 }
  0x2c   : > { %760 = shalt.err (!%p757_p8)
}
  0x2d   : > { %s914_s20 = smov 128   ;;  %s915_s28 = smov 8  }
  0x2e   : > { %661 = dma.hbm_to_vmem [thread:$0]  (!%p1016_p11), %s1243_s2, 512, %s227_s9, [#allocation7], %s914_s20, %s914_s20, %s915_s28  }
  0x2f   : > { %p39_p1 = scmp.ge.s32.totalorder %s37_s11, 2  ;;  %s46_s13 = sadd.s32 1, %s899_s23 }
  0x30   : > { %p53_p2 = scmp.ne.s32.totalorder %s899_s23, %s895_s22  ;;  %p54_p4 = scmp.eq.s32.totalorder %s911_s26, 0 }
  0x31   : > { %s1264_s11 = smov (%p39_p1, %s37_s11), 0  ;;  %p1246_p8 = scmp.eq.s32.totalorder %s988_s27, 1 }
  0x32   : > { %1244 = sst [smem:[#allocation16_spill]] %s1264_s11  ;;  %p1043_p6 = por %p54_p4, %p53_p2 }
  0x33   : > { %p1049_p10 = por %p1246_p8, %p53_p2  ;;  %s41_s15 = ssub.s32 %s907_s25, %s1264_s11 }
  0x34   : > { %p674_p11 = scmp.lt.s32.totalorder %s911_s26, 2  ;;  %p44_p12 = scmp.eq.s32.totalorder %s41_s15, 0 }
  0x35   : > { %s1247_s10 = scalar_select %p1049_p10, 1, 0 }
  0x36   : > { %s249_s9 = sand.u32 1, %s899_s23   ;;  %s610_s18 = sshll.u32 %s907_s25, 7 }
  0x37   : > { %s1057_s16 = sshll.u32 %s249_s9, 3  ;;  %s1066_s28 = scalar_lea.hbm %s1222_s0, %s610_s18 }
  0x38   : > { %s1060_s17 = scalar_select %p44_p12, %s899_s23, %s46_s13  }
  0x39   : > { %s253_s8 = scalar_lea.vmem [#allocation3], %s1057_s16  ;;  %p1073_p13 = pnand %p674_p11, %p1043_p6 }
  0x3a   : > { %1248 = sst [smem:[#allocation17_spill]] %s1060_s17  ;;  %s261_s12 = sshll.u32 %s253_s8, 4  ;;  %s1069_s12 = int_to_ptr.vmem [resolvable:$true] %s261_s12 }
  0x3b   : > { %s1080_s19 = scalar_lea.hbm %s1223_s1, %s610_s18  ;;  %s268_s20 = sand.u32 1, %s911_s26  }
  0x3c   : > { %s250_s11 = scalar_lea.sflag [#allocation4], %s249_s9  ;;  %s761_s25 = scalar_lea.hbm %s1066_s28, 128 }
  0x3d   : > { %p762_p0 = scmp.ne.s32.totalorder %s1066_s28, %s761_s25  ;;  %p763_p3 = pneg %p1073_p13 }
  0x3e   : > { %s766_s17 = scalar_lea.hbm %s1222_s0, 256  ;;  %p767_p9 = scmp.lt.u32.totalorder %s1066_s28, %s1222_s0 }
  0x3f   : > { %p764_p5 = pnand %p763_p3, %p762_p0  ;;  %p768_p1 = scmp.lt.u32.totalorder %s766_s17, %s761_s25 }
  0x40   : > { %p770_p4 = scmp.lt.u32.totalorder %s761_s25, %s1066_s28 }
  0x41   : > { %p765_p7 = pneg %p764_p5  ;;  %p769_p2 = por %p768_p1, %p767_p9 }
  0x43   : > { %p771_p6 = por %p770_p4, %p769_p2 }
  0x45   : > { %p772_p8 = pnand %p771_p6, %p765_p7 }
  0x47   : > { %775 = shalt.err (!%p772_p8)
}
  0x48   : > { %s776_s9 = scalar_lea.vmem %s1069_s12, 128  ;;  %s916_s18 = smov [#allocation3]  }
  0x49   : > { %p777_p11 = scmp.ne.s32.totalorder %s1069_s12, %s776_s9  ;;  %s781_s13 = sshll.u32 %s916_s18, 4  ;;  %s782_s13 = int_to_ptr.vmem [resolvable:$false] %s781_s13 }
  0x4a   : > { %s783_s23 = scalar_lea.vmem %s782_s13, 256  ;;  %p784_p5 = scmp.lt.s32.totalorder %s1069_s12, %s782_s13 }
  0x4b   : > { %p779_p12 = pnand %p777_p11, %p763_p3  ;;  %p785_p9 = scmp.lt.s32.totalorder %s783_s23, %s776_s9 }
  0x4d   : > { %p780_p0 = pneg %p779_p12  ;;  %p786_p1 = por %p785_p9, %p784_p5 }
  0x4f   : > { %p787_p2 = pnand %p786_p1, %p780_p0 }
  0x51   : > { %790 = shalt.err (!%p787_p2)
}
  0x52   : > { %665 = dma.hbm_to_vmem [thread:$0]  (!%p1073_p13), %s1066_s28, 128, %s1069_s12, %s250_s11  }
  0x53   : > { %s272_s25 = scalar_lea.vmem [#allocation6], %s1057_s16  ;;  %s269_s14 = scalar_lea.sflag [#allocation7], %s268_s20 }
  0x54   : > { %s279_s17 = sshll.u32 %s272_s25, 4  ;;  %s791_s8 = scalar_lea.hbm %s1080_s19, 128  ;;  %s280_s17 = int_to_ptr.vmem [resolvable:$true] %s279_s17 }
  0x55   : > { %p792_p7 = scmp.ne.s32.totalorder %s1080_s19, %s791_s8  ;;  %s796_s18 = scalar_lea.hbm %s1223_s1, 256 }
  0x56   : > { %p797_p8 = scmp.lt.u32.totalorder %s1080_s19, %s1223_s1  ;;  %p798_p11 = scmp.lt.u32.totalorder %s796_s18, %s791_s8 }
  0x57   : > { %p794_p4 = pnand %p792_p7, %p763_p3  ;;  %p800_p0 = scmp.lt.u32.totalorder %s791_s8, %s1080_s19 }
  0x58   : > { %p799_p12 = por %p798_p11, %p797_p8 }
  0x59   : > { %p795_p6 = pneg %p794_p4 }
  0x5a   : > { %p801_p5 = por %p800_p0, %p799_p12 }
  0x5c   : > { %p802_p9 = pnand %p801_p5, %p795_p6 }
  0x5e   : > { %805 = shalt.err (!%p802_p9)
}
  0x5f   : > { %s806_s11 = scalar_lea.vmem %s280_s17, 128  ;;  %s917_s16 = smov [#allocation6]  }
  0x60   : > { %p807_p1 = scmp.ne.s32.totalorder %s280_s17, %s806_s11  ;;  %s811_s28 = sshll.u32 %s917_s16, 4  ;;  %s812_s28 = int_to_ptr.vmem [resolvable:$false] %s811_s28 }
  0x61   : > { %s813_s12 = scalar_lea.vmem %s812_s28, 256  ;;  %p814_p4 = scmp.lt.s32.totalorder %s280_s17, %s812_s28 }
  0x62   : > { %p809_p2 = pnand %p807_p1, %p763_p3  ;;  %p815_p10 = scmp.lt.s32.totalorder %s813_s12, %s806_s11 }
  0x64   : > { %p810_p7 = pneg %p809_p2  ;;  %p816_p8 = por %p815_p10, %p814_p4 }
  0x66   : > { %p817_p11 = pnand %p816_p8, %p810_p7 }
  0x68   : > { %820 = shalt.err (!%p817_p11)
}
  0x69   : > { %668 = dma.hbm_to_vmem [thread:$0]  (!%p1073_p13), %s1080_s19, 128, %s280_s17, %s269_s14  }
  0x6a   : > { %p1250_p6 = scmp.ne.s32.totalorder %s1241_s7, 0 }
  0x6b   : > { %s1133_s20 = sand.u32 (!%p1250_p6), 1, %s895_s22   ;;  %p1251_p10 = scmp.ne.s32.totalorder (!%p1250_p6), %s1239_s29, 0 }
  0x6c   : > { %288 = sbr.rel (%p1250_p6) target bundleno = 683 (0x2ab), region = 44  ;;  %s1136_s25 = sshll.u32 (!%p1250_p6), %s1133_s20, 3 }
  0x6d   : > { %s291_s8 = scalar_lea.sflag (!%p1250_p6), [#allocation4], %s1133_s20  ;;  %s294_s2 = scalar_lea.vmem (!%p1250_p6), [#allocation3], %s1136_s25 }
  0x73   : > { %874 = dma.done.wait (%p1251_p10), %s291_s8, 128  }
  0x74   : > { %876 = vsyncadd (%p1251_p10), %s291_s8, 4294967168  ;;  %s299_s7 = sand.u32 1, %s988_s27   ;;  %s303_s19 = scalar_lea.vmem [#allocation6], %s1136_s25 }
  0x75   : > { %s300_s15 = scalar_lea.sflag [#allocation7], %s299_s7 }
  0x76   : > { %878 = dma.done.wait (%p1251_p10), %s300_s15, 128  }
  0x77   : > { %880 = vsyncadd (%p1251_p10), %s300_s15, 4294967168  ;;  %p1252_p13 = scmp.eq.s32.totalorder %s988_s27, 0 }
  0x79   : > { %882 = dma.done.wait (%p1252_p13), [#allocation7], 512   ;;  %p1253_p3 = pmov %p1252_p13 }
  0x7a   : > { %v918_v0 = vmov 0.0|0.0   ;;  %vm919_vm0 = vmmov 0   ;;  %v920_v1 = vmov 0.0   ;;  %v343_v2 = vld [vmem:[#allocation8] sm:$0xff]  ;;  %v344_v3 = vld [vmem:[#allocation8 + $0x8] sm:$0xff]  ;;  %v345_v4 = vld [vmem:[#allocation8 + $0x10] sm:$0xff] }
  0x7b   : > { %884 = vsyncadd (%p1253_p3), [#allocation7], 4294966784  ;;  %642 = vmatprep.subr.bf16.mxu0 %v918_v0  ;;  %639 = vmatprep.mubr.msk.f32.mxu0 %vm919_vm0, %v920_v1  ;;  %v643_v5 = vpack.c.bf16 %v344_v3, %v343_v2  ;;  %v346_v6 = vld [vmem:[#allocation8 + $0x18] sm:$0xff]  ;;  %v342_v8 = vld [vmem:[%s294_s2] sm:$0xff]  ;;  %vm347_vm1 = vcmask 261120   ;;  %s623_s13 = sshll.u32 %s903_s24, 7 }
  0x7c   : > { %v646_v7 = vpack.c.bf16 %v346_v6, %v345_v4  ;;  %v619_v9 = vld [vmem:[%s1225_s3] ss:$0 sm:$0xff]  ;;  %s340_s23 = scalar_lea.vmem [#allocation9], %s1136_s25  ;;  %s1172_s12 = scalar_lea.hbm %s1228_s6, %s623_s13 }
  0x7d   : > { %644 = vmatpush3.bf16.msra.mxu0 %v643_v5  ;;  %v433_v11 = vld [vmem:[%s303_s19] sm:$0xff]  ;;  %s491_s11 = sshll.u32 %s340_s23, 4  ;;  %s478_s8 = scalar_lea.sflag [#allocation5], %s1133_s20  ;;  %s1174_s11 = int_to_ptr.vmem [resolvable:$true] %s491_s11 }
  0x7e   : > { %645 = vmatprep.subr.bf16.mxu0 %v918_v0  ;;  %v620_v26 = vld [vmem:[%s1226_s4] ss:$0 sm:$0xff]  ;;  %s821_s2 = scalar_lea.vmem %s1174_s11, 128  ;;  %p1254_p0 = scmp.ne.s32.totalorder %s1247_s10, 0 }
  0x7f   : > { %v621_v28 = vld [vmem:[%s1227_s5] ss:$0 sm:$0xff]  ;;  %p822_p12 = scmp.ne.s32.totalorder %s1174_s11, %s821_s2  ;;  %s921_s24 = smov [#allocation9]  }
  0x80   : > { %s825_s25 = sshll.u32 %s921_s24, 4  ;;  %s826_s25 = int_to_ptr.vmem [resolvable:$false] %s825_s25 }
  0x81   : > { %647 = vmatpush3.bf16.msra.mxu0 %v646_v7  ;;  %p823_p5 = pnand %p822_p12, %p1254_p0  ;;  %s827_s7 = scalar_lea.vmem %s826_s25, 256 }
  0x82   : > { %p828_p1 = scmp.lt.s32.totalorder %s1174_s11, %s826_s25  ;;  %p829_p2 = scmp.lt.s32.totalorder %s827_s7, %s821_s2 }
  0x83   : > { %p824_p9 = pneg %p823_p5 }
  0x84   : > { %640 = vmatmul.mubr.msk.f32.vlgmr.msra.gmra.mrb[0].mxu0 %vm347_vm1, %v342_v8  ;;  %p830_p7 = por %p829_p2, %p828_p1 }
  0x86   : > { %p831_p4 = pnand %p830_p7, %p824_p9 }
 0x157   : > { %v417_v10 = vpop.f32.mrb[0].mxu0 }
 0x158   : > { %v432_v12 = vadd.f32 %v619_v9, %v417_v10  ;;  %v641_v13 = vpop.f32.mrb[1].mxu0 }
 0x15a   : > { %v434_v14 = vadd.f32 %v433_v11, %v432_v12 }
 0x15c   : > { %435 = vst.msk [vmem:[#allocation2] sm:$0xff] %vm347_vm1, %v434_v14 }
 0x163   : > { %v448_v15 = vld [vmem:[#allocation2] sm:$0xff] }
 0x164   : > { %v449_v16 = vsel %vm347_vm1, %v448_v15, 0.0 }
 0x165   : > { %450 = vadd.xlane.f32.xlu0 %v449_v16 }
 0x1f2   : > { %v451_v17 = vpop.xlane.xlu0 %450 }
 0x1f3   : > { %v452_v18 = vmul.f32 0.03125, %v451_v17 }
 0x1f5   : > { %v453_v19 = vsub.f32 %v448_v15, %v452_v18 }
 0x1f7   : > { %v454_v20 = vmul.f32 %v453_v19, %v453_v19 }
 0x1f9   : > { %v455_v21 = vsel %vm347_vm1, %v454_v20, 0.0 }
 0x1fa   : > { %456 = vadd.xlane.f32.xlu0 %v455_v21 }
 0x287   : > { %v457_v22 = vpop.xlane.xlu0 %456 }
 0x288   : > { %v458_v23 = vmul.f32 0.03125, %v457_v22 }
 0x28a   : > { %v459_v24 = vadd.f32 1e-12, %v458_v23 }
 0x28c   : > { %731 = vrsqrt.f32 %v459_v24 }
 0x296   : > { %v732_v25 = vpop.eup %731 }
 0x297   : > { %v461_v27 = vmul.f32 %v732_v25, %v453_v19 }
 0x299   : > { %v468_v29 = vmul.f32 %v620_v26, %v461_v27 }
 0x29b   : > { %v475_v30 = vadd.f32 %v621_v28, %v468_v29 }
 0x29d   : > { %476 = vst.msk [vmem:[%s340_s23] sm:$0xff] %vm347_vm1, %v475_v30 }
 0x29e   : > { %834 = shalt.err (!%p831_p4)
}
 0x29f   : > { %s835_s20 = scalar_lea.hbm %s1172_s12, 128  ;;  %s839_s27 = scalar_lea.hbm %s1228_s6, 256 }
 0x2a0   : > { %p836_p8 = scmp.ne.s32.totalorder %s1172_s12, %s835_s20  ;;  %p840_p10 = scmp.lt.u32.totalorder %s1172_s12, %s1228_s6 }
 0x2a1   : > { %p841_p13 = scmp.lt.u32.totalorder %s839_s27, %s835_s20  ;;  %p843_p12 = scmp.lt.u32.totalorder %s835_s20, %s1172_s12 }
 0x2a2   : > { %p837_p11 = pnand %p836_p8, %p1254_p0 }
 0x2a3   : > { %p842_p3 = por %p841_p13, %p840_p10 }
 0x2a4   : > { %p838_p6 = pneg %p837_p11 }
 0x2a5   : > { %p844_p5 = por %p843_p12, %p842_p3 }
 0x2a7   : > { %p845_p9 = pnand %p844_p5, %p838_p6 }
 0x2a9   : > { %848 = shalt.err (!%p845_p9)
}
 0x2aa   : > { %656 = dma.vmem_to_hbm [thread:$0]  (%p1254_p0), %s1174_s11, 128, %s1172_s12, %s478_s8  }
 0x2ab PF: > { %s503_s14 = sand.u32 1, %s891_s21   ;;  %p1255_p1 = scmp.ne.s32.totalorder %s1240_s30, 0 }
 0x2ac   : > { %p1256_p2 = scmp.ge.s32.totalorder %s911_s26, 2  ;;  %s504_s9 = scalar_lea.sflag [#allocation5], %s503_s14 }
 0x2ae   : > { %p670_p7 = pnand %p1256_p2, %p1255_p1 }
 0x2b0   : > { %886 = dma.done.wait (!%p670_p7), %s504_s9, 128  }
 0x2b1   : > { %888 = vsyncadd (!%p670_p7), %s504_s9, 4294967168  ;;  %s25_s26 = sadd.s32 1, %s911_s26   ;;  %s1257_s18 = sld [smem:[#allocation14_spill]] }
 0x2b2   : > { %p22_p4 = scmp.ge.s32.totalorder %s25_s26, 4   ;;  %s1258_s23 = sld [smem:[#allocation17_spill]] }
 0x2b3   : > { %s1259_s24 = sld [smem:[#allocation15_spill]]  ;;  %s1260_s25 = sld [smem:[#allocation16_spill]] }
 0x2b4   : > { %s1261_s21 = smov %s895_s22  ;;  %24 = sbr.rel (!%p22_p4) target bundleno = 10 (0xa), region = 119 }
 0x2b7   : > { %s1262_s22 = smov %s1257_s18 }
 0x2bb   :  { %509 = vsyncpa [#allocation4], 1 }
 0x2bc   :  { %511 = vsyncpa [#allocation4 + $0x1], 1 }
 0x2bd   :  { %512 = vsyncpa [#allocation7], 1 }
 0x2be   :  { %514 = vsyncpa [#allocation7 + $0x1], 1 }
 0x2bf   :  { %515 = vsyncpa [#allocation5], 1 }
 0x2c0   :  { %517 = vsyncpa [#allocation5 + $0x1], 1 }

</bundles_post_ra>
